<compile_context>
chip_gen: v6e
topology: v6e:2x2x1
jax: 0.10.0
libtpu: 0.0.40
codegen_flags: <defaults>
</compile_context>

<pallas_src>
import jax
import jax.numpy as jnp
from jax import lax
from jax.experimental import pallas as pl
from jax.experimental.pallas import tpu as pltpu


def _round_up(x, m):
    return (x + m - 1) // m * m


def _round_down(x, m):
    return (x // m) * m


def _pre_pred_kernel(x_ref, w_ref, b_ref, o_ref, acc_ref):
    # x_ref  : (tm, tk)  activation tile
    # w_ref  : (2,  tk)  fused weights  [w_e ; w_c]
    # b_ref  : (2,  1)   fused biases   (f32)
    # o_ref  : (2,  tm)  lane-dense output: row 0 = pred_e, row 1 = pred_c
    # acc_ref: (2,  tm)  f32 accumulator scratch (resident across the K axis)
    k = pl.program_id(1)

    @pl.when(k == 0)
    def _():
        acc_ref[...] = jnp.zeros_like(acc_ref)

    acc_ref[...] += lax.dot_general(
        w_ref[...], x_ref[...],
        dimension_numbers=(((1,), (1,)), ((), ())),   # contract F with F -> (2, tm)
        preferred_element_type=jnp.float32)

    @pl.when(k == pl.num_programs(1) - 1)
    def _():
        o_ref[...] = (acc_ref[...] + b_ref[...]).astype(o_ref.dtype)


_X_TILE_BUDGET = 24 * 1024 * 1024   # doubled x-tile budget; under v7x's 32 MiB scoped VMEM
_MIN_TM = 512                       # below ~512 rows HBM utilization falls off the roofline
_FAST_PATH_BYTES = 1 << 20          # tiny inputs: pallas_call fixed cost dominates


def _choose_tiles(F, itemsize):
    tm_full = _round_down(_X_TILE_BUDGET // (2 * F * itemsize), 128)
    if tm_full >= _MIN_TM or F % 128 != 0:
        # Single K step (tk == F).  If F is not lane-aligned we cannot tile the
        # contraction without masking, so keep tk = F even if tm ends up small.
        # TODO(synk): mask/zero the K tail to allow F-tiling for huge, unaligned F.
        return max(128, tm_full), F
    # F is huge and lane-aligned: split the contraction so tm stays large.
    tm = _MIN_TM
    tk = max(128, _round_down(_X_TILE_BUDGET // (2 * tm * itemsize), 128))
    while F % tk != 0:               # avoid a partial K tile feeding the accumulator
        tk -= 128
    return tm, tk


def pre_predictions(doc_sents_h, w_e, b_e, w_c, b_c):
    """doc_sents_h: (B, S, F); w_*: (F,); b_*: scalar -> (pred_e, pred_c), each (B, S)."""
    B, S, F = doc_sents_h.shape
    M = B * S
    dtype = doc_sents_h.dtype
    itemsize = jnp.dtype(dtype).itemsize

    # Fused params: weights in the activation dtype (keeps bf16 pipelines bf16),
    # bias kept in f32 and added to the f32 accumulator.
    w = jnp.stack([w_e, w_c], axis=0).astype(dtype)                      # (2, F)
    b = jnp.stack([jnp.asarray(b_e, jnp.float32),
                   jnp.asarray(b_c, jnp.float32)]).reshape(2, 1)         # (2, 1)

    # Fast path: for tiny inputs plain XLA beats the pallas_call setup cost.
    if M * F * itemsize < _FAST_PATH_BYTES:
        p = jnp.einsum("cf,bsf->cbs", w, doc_sents_h,
                       preferred_element_type=jnp.float32)
        p = (p + b.reshape(2, 1, 1)).astype(dtype)
        return p[0], p[1]

    x2d = doc_sents_h.reshape(M, F)

    tm, tk = _choose_tiles(F, itemsize)
    tm = min(tm, _round_up(M, 128))
    if M > 128:
        # >= 2 row tiles so the "parallel" axis can shard across v7x's two TCs.
        tm = min(tm, _round_up(-(-M // 2), 128))
    grid_m = pl.cdiv(M, tm)
    grid_k = pl.cdiv(F, tk)

    # No host-side padding of x: Pallas masks the partial last row tile.  Only
    # the tiny output is padded to whole tiles (full-width stores); the
    # overhang columns (unspecified data from the masked x tail) are sliced off.
    M_out = grid_m * tm

    vmem_needed = (2 * tm * tk * itemsize        # double-buffered x tile
                   + 2 * 2 * tk * itemsize       # fused weights (double-buffered)
                   + 2 * 2 * tm * itemsize       # output tiles
                   + 2 * tm * 4                  # f32 accumulator scratch
                   + (1 << 20))                  # headroom
    vmem_limit = int(min(max(32 * 1024 * 1024, vmem_needed), 60 * 1024 * 1024))

    out = pl.pallas_call(
        _pre_pred_kernel,
        out_shape=jax.ShapeDtypeStruct((2, M_out), dtype),
        grid_spec=pltpu.PrefetchScalarGridSpec(
            num_scalar_prefetch=0,
            grid=(grid_m, grid_k),
            in_specs=[
                pl.BlockSpec((tm, tk), lambda i, k: (i, k)),   # x row/feature tile
                pl.BlockSpec((2, tk), lambda i, k: (0, k)),    # fused weights
                pl.BlockSpec((2, 1), lambda i, k: (0, 0)),     # fused biases (resident)
            ],
            out_specs=pl.BlockSpec((2, tm), lambda i, k: (0, i)),
            scratch_shapes=[pltpu.VMEM((2, tm), jnp.float32)],
        ),
        compiler_params=pltpu.CompilerParams(
            dimension_semantics=("parallel", "arbitrary"),
            vmem_limit_bytes=vmem_limit),
    )(x2d, w, b)

    pred_e = out[0, :M].reshape(B, S)
    pred_c = out[1, :M].reshape(B, S)
    return pred_e, pred_c


if __name__ == "__main__":
    # configs: gnn_dims = "192,32", att_heads = "4,4"  ->  feat_dim = 32 * 4 = 128
    F = 128
    key = jax.random.PRNGKey(0)
    kx, kwe, kbe, kwc, kbc, kx2 = jax.random.split(key, 6)

    # Deterministic Linear(feat_dim, 1) params (uniform like torch's default init).
    bound = 1.0 / jnp.sqrt(F)
    w_e = jax.random.uniform(kwe, (F,), minval=-bound, maxval=bound, dtype=jnp.float32)
    b_e = jax.random.uniform(kbe, (), minval=-bound, maxval=bound, dtype=jnp.float32)
    w_c = jax.random.uniform(kwc, (F,), minval=-bound, maxval=bound, dtype=jnp.float32)
    b_c = jax.random.uniform(kbc, (), minval=-bound, maxval=bound, dtype=jnp.float32)

    def ref(x):
        return (jnp.einsum("bsf,f->bs", x, w_e) + b_e,
                jnp.einsum("bsf,f->bs", x, w_c) + b_c)

    # 1) Module-sized input (B=2, S=8): takes the XLA fast path.
    x_small = jax.random.normal(kx, (2, 8, F), dtype=jnp.float32)
    pe_s, pc_s = pre_predictions(x_small, w_e, b_e, w_c, b_c)
    jax.block_until_ready((pe_s, pc_s))
    re_s, rc_s = ref(x_small)
    assert pe_s.shape == (2, 8) and pc_s.shape == (2, 8)
    assert jnp.allclose(pe_s, re_s, atol=1e-5, rtol=1e-5)
    assert jnp.allclose(pc_s, rc_s, atol=1e-5, rtol=1e-5)

    # 2) Larger, ragged row count (M = 3000): exercises the Pallas kernel,
    #    including the masked partial last row tile (no host-side padding of x).
    x_big = jax.random.normal(kx2, (3, 1000, F), dtype=jnp.float32)
    pe_b, pc_b = pre_predictions(x_big, w_e, b_e, w_c, b_c)
    jax.block_until_ready((pe_b, pc_b))
    re_b, rc_b = ref(x_big)
    assert pe_b.shape == (3, 1000) and pc_b.shape == (3, 1000)
    assert jnp.allclose(pe_b, re_b, atol=1e-4, rtol=1e-5)
    assert jnp.allclose(pc_b, rc_b, atol=1e-4, rtol=1e-5)

    print("KERNEL_OK")
</pallas_src>

<mosaic_0001>
module attributes {stable_mosaic.version = 11 : i64} {
  func.func @_pre_pred_kernel(%arg0: i32, %arg1: i32, %arg2: memref<1536x128xf32, #tpu.memory_space<vmem>>, %arg3: memref<2x128xf32, #tpu.memory_space<vmem>>, %arg4: memref<2x1xf32, #tpu.memory_space<vmem>>, %arg5: memref<2x1536xf32, #tpu.memory_space<vmem>>, %arg6: memref<2x1536xf32, #tpu.memory_space<vmem>>) attributes {dimension_semantics = [#tpu.dimension_semantics<parallel>, #tpu.dimension_semantics<arbitrary>], iteration_bounds = array<i64: 2, 1>, scalar_prefetch = 0 : i64, scratch_operands = 1 : i64, tpu.core_type = #tpu.core_type<tc>, window_params = [{transform_indices = @transform_0, window_bounds = array<i64: 1536, 128>}, {transform_indices = @transform_1, window_bounds = array<i64: 2, 128>}, {pipeline_mode = #tpu.pipeline_mode<synchronous>, transform_indices = @transform_2, window_bounds = array<i64: 2, 1>}, {transform_indices = @transform_3, window_bounds = array<i64: 2, 1536>}]} {
    %c0_i32 = arith.constant 0 : i32
    %0 = arith.cmpi eq, %arg1, %c0_i32 : i32
    %1 = arith.extui %0 : i1 to i32
    %c0_i32_0 = arith.constant 0 : i32
    %2 = arith.cmpi ne, %1, %c0_i32_0 : i32
    scf.if %2 {
      %cst_10 = arith.constant 0.000000e+00 : f32
      %12 = vector.broadcast %cst_10 : f32 to vector<2x1536xf32>
      %c0_11 = arith.constant 0 : index
      %c0_12 = arith.constant 0 : index
      %13 = vector.load %arg6[%c0_11, %c0_12] : memref<2x1536xf32, #tpu.memory_space<vmem>>, vector<2x1536xf32>
      tpu.vector_store %arg6[%c0_11, %c0_12], %12 {strides = array<i32>} : memref<2x1536xf32, #tpu.memory_space<vmem>>, vector<2x1536xf32>,
    } else {
    }
    %c0 = arith.constant 0 : index
    %c0_1 = arith.constant 0 : index
    %3 = vector.load %arg6[%c0, %c0_1] : memref<2x1536xf32, #tpu.memory_space<vmem>>, vector<2x1536xf32>
    %c0_2 = arith.constant 0 : index
    %c0_3 = arith.constant 0 : index
    %4 = vector.load %arg3[%c0_2, %c0_3] : memref<2x128xf32, #tpu.memory_space<vmem>>, vector<2x128xf32>
    %c0_4 = arith.constant 0 : index
    %c0_5 = arith.constant 0 : index
    %5 = vector.load %arg2[%c0_4, %c0_5] : memref<1536x128xf32, #tpu.memory_space<vmem>>, vector<1536x128xf32>
    %cst = arith.constant dense<0.000000e+00> : vector<2x1536xf32>
    %6 = tpu.matmul %4, %5, %cst {dimension_numbers = #tpu.dot_dimension_numbers<[1], [1], [0], [0], [0, 0, 1, 0], [], []>} : vector<2x128xf32>, vector<1536x128xf32>, vector<2x1536xf32> -> vector<2x1536xf32>
    %7 = arith.addf %3, %6 : vector<2x1536xf32>
    %c0_6 = arith.constant 0 : index
    %c0_7 = arith.constant 0 : index
    %8 = vector.load %arg6[%c0_6, %c0_7] : memref<2x1536xf32, #tpu.memory_space<vmem>>, vector<2x1536xf32>
    tpu.vector_store %arg6[%c0_6, %c0_7], %7 {strides = array<i32>} : memref<2x1536xf32, #tpu.memory_space<vmem>>, vector<2x1536xf32>,
    %c0_i32_8 = arith.constant 0 : i32
    %9 = arith.cmpi eq, %arg1, %c0_i32_8 : i32
    %10 = arith.extui %9 : i1 to i32
    %c0_i32_9 = arith.constant 0 : i32
    %11 = arith.cmpi ne, %10, %c0_i32_9 : i32
    scf.if %11 {
      %c0_10 = arith.constant 0 : index
      %c0_11 = arith.constant 0 : index
      %12 = vector.load %arg6[%c0_10, %c0_11] : memref<2x1536xf32, #tpu.memory_space<vmem>>, vector<2x1536xf32>
      %c0_12 = arith.constant 0 : index
      %c0_13 = arith.constant 0 : index
      %13 = vector.load %arg4[%c0_12, %c0_13] : memref<2x1xf32, #tpu.memory_space<vmem>>, vector<2x1xf32>
      %14 = vector.broadcast %13 : vector<2x1xf32> to vector<2x1536xf32>
      %15 = arith.addf %12, %14 : vector<2x1536xf32>
      %c0_14 = arith.constant 0 : index
      %c0_15 = arith.constant 0 : index
      %16 = vector.load %arg5[%c0_14, %c0_15] : memref<2x1536xf32, #tpu.memory_space<vmem>>, vector<2x1536xf32>
      tpu.vector_store %arg5[%c0_14, %c0_15], %15 {strides = array<i32>} : memref<2x1536xf32, #tpu.memory_space<vmem>>, vector<2x1536xf32>,
    } else {
    }
    return
  }
  func.func @transform_0(%arg0: i32, %arg1: i32) -> (i32, i32) {
    %c0_i32 = arith.constant 0 : i32
    return %arg0, %arg1 : i32, i32
  }
  func.func @transform_1(%arg0: i32, %arg1: i32) -> (i32, i32) {
    %c0_i32 = arith.constant 0 : i32
    %c0_i32_0 = arith.constant 0 : i32
    return %c0_i32, %arg1 : i32, i32
  }
  func.func @transform_2(%arg0: i32, %arg1: i32) -> (i32, i32) {
    %c0_i32 = arith.constant 0 : i32
    %c0_i32_0 = arith.constant 0 : i32
    %c0_i32_1 = arith.constant 0 : i32
    return %c0_i32, %c0_i32_0 : i32, i32
  }
  func.func @transform_3(%arg0: i32, %arg1: i32) -> (i32, i32) {
    %c0_i32 = arith.constant 0 : i32
    %c0_i32_0 = arith.constant 0 : i32
    return %c0_i32, %arg0 : i32, i32
  }
}

</mosaic_0001>

<bundles_post_ra>
// kernel: tpu_custom_call.1
= control target key start
LH: loop header
LB: loop body
LE: loop exit
PB: predicated region body
PF: predicated region fallthrough
CT: control target
= control target key end

     0   :  { %8 = vsyncpa [#allocation4], 0  ;;  %s1922_s0 = inlined_call_operand.hbm [shape: f32[3000,128], index: 0, kind: input, shape index: {}]   ;;  %s1923_s1 = inlined_call_operand.hbm [shape: f32[2,128], index: 1, kind: input, shape index: {}]   ;;  %s1924_s2 = inlined_call_operand.vmem [shape: f32[2,1], index: 2, kind: input, shape index: {}]   ;;  %s1925_s3 = inlined_call_operand.hbm [shape: f32[2,3072], index: 3, kind: output, shape index: {}]  }
   0x1   :  { %10 = vsyncpa [#allocation4 + $0x1], 0 }
   0x2   :  { %11 = vsyncpa [#allocation7], 0 }
   0x3   :  { %12 = vsyncpa [#allocation5], 0 }
   0x4   :  { %14 = vsyncpa [#allocation5 + $0x1], 0  ;;  %s1532_s12 = smov 0   ;;  %s1534_s13 = smov 0  }
   0x5   :  { %s1536_s14 = smov 0   ;;  %s1538_s15 = smov 0  }
   0x6   :  { %s1540_s16 = smov 0   ;;  %s1542_s17 = smov 0  }
   0x7 LB: > { %s1069_s18 = sadd.s32 4294967295, %s1502_s17   ;;  %s1070_s19 = sadd.s32 4294967294, %s1502_s17   ;;  %s1502_s17 = sphi %s1542_s17, %s20_s17   ;;  %s1498_s16 = sphi %s1540_s16, %s1941_s16   ;;  %s1494_s15 = sphi %s1538_s15, %s1940_s15   ;;  %s1490_s14 = sphi %s1536_s14, %s1939_s14   ;;  %s1486_s13 = sphi %s1534_s13, %s1938_s13   ;;  %s1482_s12 = sphi %s1532_s12, %s1937_s12  }
   0x8   : > { %s32_s20 = sadd.s32 1, %s1498_s16  ;;  %s41_s21 = sadd.s32 1, %s1490_s14 }
   0x9   : > { %p34_p0 = scmp.ge.s32.totalorder %s32_s20, 2  ;;  %p48_p1 = scmp.ne.s32.totalorder %s1490_s14, %s1486_s13 }
   0xa   : > { %p49_p2 = scmp.eq.s32.totalorder %s1502_s17, 0  ;;  %p54_p3 = scmp.ne.s32.totalorder %s1486_s13, %s1482_s12 }
   0xb   : > { %s1943_s20 = smov (%p34_p0, %s32_s20), 0  ;;  %p1577_p5 = scmp.eq.s32.totalorder %s1069_s18, 0 }
   0xc   : > { %p1573_p4 = por %p49_p2, %p48_p1  ;;  %s36_s24 = ssub.s32 %s1498_s16, %s1943_s20 }
   0xd   : > { %p125_p6 = scmp.eq.s32.totalorder %s1069_s18, 1  ;;  %p39_p7 = scmp.eq.s32.totalorder %s36_s24, 0 }
   0xe   : > { %p1585_p8 = por %p1577_p5, %p54_p3  ;;  %p131_p10 = scmp.eq.s32.totalorder %s1070_s19, 1 }
   0xf   : > { %p1589_p9 = por %p125_p6, %p48_p1  ;;  %p1071_p12 = scmp.ge.s32.totalorder %s1502_s17, 1 }
  0x10   : > { %s1930_s25 = scalar_select %p1585_p8, 1, 0 }
  0x11   : > { %s1931_s26 = scalar_select %p1589_p9, 1, 0 }
  0x12   : > { %s1594_s27 = scalar_select %p39_p7, %s1490_s14, %s41_s21  }
  0x13   : > { %p1596_p11 = por %p131_p10, %p54_p3  ;;  %p138_p13 = scmp.lt.s32.totalorder %s1502_s17, 3 }
  0x14   : > { %s1504_s30 = smov [#allocation6]  }
  0x15   : > { %s1932_s28 = scalar_select %p1596_p11, 1, 0 }
  0x16   : > { %p1602_p0 = pnand %p1071_p12, %p138_p13  ;;  %s153_s4 = sshll.u32 %s1504_s30, 4  ;;  %s154_s4 = int_to_ptr.vmem [resolvable:$true] %s153_s4 }
  0x17   : > { %s1377_s5 = scalar_lea.vmem %s154_s4, 32  ;;  %p1385_p11 = scmp.lt.s32.totalorder %s154_s4, %s154_s4 }
  0x18   : > { %p1300_p1 = pneg %p1602_p0  ;;  %p1378_p3 = scmp.ne.s32.totalorder %s154_s4, %s1377_s5 }
  0x19   : > { %p1386_p9 = scmp.lt.s32.totalorder %s1377_s5, %s1377_s5 }
  0x1a   : > { %p1301_p2 = pnand %p1300_p1, %p1577_p5 }
  0x1b   : > { %p1387_p8 = por %p1386_p9, %p1385_p11 }
  0x1c   : > { %p1368_p6 = pneg %p1301_p2 }
  0x1e   : > { %p1380_p7 = pnand %p1378_p3, %p1368_p6 }
  0x20   : > { %p1381_p10 = pneg %p1380_p7 }
  0x22   : > { %p1388_p12 = pnand %p1387_p8, %p1381_p10 }
  0x24   : > { %1391 = shalt.err (!%p1388_p12)
}
  0x25   : > { %1303 = dma.hbm_to_vmem [thread:$0]  (!%p1301_p2), %s1923_s1, 32, %s154_s4, [#allocation7]  }
  0x26   : > { %p1073_p13 = scmp.ge.s32.totalorder %s1502_s17, 2 }
  0x28   : > { %163 = sbr.rel (%p1073_p13) target bundleno = 79 (0x4f), region = 24 }
  0x2d   : > { %166 = sbr.rel (!%p1573_p4) target bundleno = 79 (0x4f), region = 28  ;;  %s167_s8 = sand.u32 (%p1573_p4), 1, %s1490_s14  }
  0x2e   : > { %s172_s9 = smul.u32 (%p1573_p4), 192, %s1498_s16  ;;  %s1623_s21 = scalar_lea.sflag (%p1573_p4), [#allocation4], %s167_s8 }
  0x2f   : > { %s1290_s10 = smul.u32 (%p1573_p4), 1536, %s167_s8 }
  0x30   : > { %s173_s11 = ssub.s32 (%p1573_p4), 375, %s172_s9 }
  0x31   : > { %p174_p8 = scmp.lt.s32.totalorder (%p1573_p4), %s173_s11, 192  ;;  %s171_s24 = scalar_lea.vmem (%p1573_p4), [#allocation3], %s1290_s10 }
  0x33   : > { %s1945_s11 = smov (!%p174_p8, %s173_s11), 192 }
  0x34   : > { %s1620_s18 = sshll.u32 %s1945_s11, 7 }
  0x35   : > { %s178_s19 = ssub.s32 24576, %s1620_s18 }
  0x36   : > { %179 = vsyncadd %s1623_s21, %s178_s19  ;;  %p1075_p4 = scmp.ne.s32.totalorder %s1620_s18, 0  ;;  %s1084_s22 = smul.u32 24576, %s1498_s16 }
  0x37   : > { %s185_s30 = sshll.u32 %s171_s24, 4  ;;  %s1396_s10 = scalar_lea.hbm %s1922_s0, 48000  ;;  %s1633_s30 = int_to_ptr.vmem [resolvable:$true] %s185_s30 }
  0x38   : > { %s1631_s6 = scalar_lea.hbm %s1922_s0, %s1084_s22 }
  0x39   : > { %s1392_s7 = scalar_lea.hbm %s1631_s6, %s1620_s18 }
  0x3a   : > { %p1393_p9 = scmp.ne.s32.totalorder %s1631_s6, %s1392_s7  ;;  %p1398_p2 = scmp.lt.s32.totalorder %s1396_s10, %s1392_s7 }
  0x3c   : > { %p1394_p11 = pnand %p1393_p9, %p1075_p4 }
  0x3e   : > { %p1395_p1 = pneg %p1394_p11 }
  0x40   : > { %p1400_p6 = pnand %p1398_p2, %p1395_p1 }
  0x42   : > { %1403 = shalt.err (!%p1400_p6)
}
  0x43   : > { %s1404_s11 = scalar_lea.vmem %s1633_s30, %s1620_s18  ;;  %s1505_s19 = smov [#allocation3]  }
  0x44   : > { %p1405_p3 = scmp.ne.s32.totalorder %s1633_s30, %s1404_s11  ;;  %s1408_s24 = sshll.u32 %s1505_s19, 4  ;;  %s1409_s24 = int_to_ptr.vmem [resolvable:$false] %s1408_s24 }
  0x45   : > { %s1410_s22 = scalar_lea.vmem %s1409_s24, 49152  ;;  %p1411_p12 = scmp.lt.s32.totalorder %s1633_s30, %s1409_s24 }
  0x46   : > { %p1406_p7 = pnand %p1405_p3, %p1075_p4  ;;  %p1412_p8 = scmp.lt.s32.totalorder %s1410_s22, %s1404_s11 }
  0x48   : > { %p1407_p10 = pneg %p1406_p7  ;;  %p1413_p9 = por %p1412_p8, %p1411_p12 }
  0x4a   : > { %p1414_p11 = pnand %p1413_p9, %p1407_p10 }
  0x4c   : > { %1417 = shalt.err (!%p1414_p11)
}
  0x4d   : > { %s1506_s4 = smov 128   ;;  %s1507_s5 = smov 8  }
  0x4e   : > { %191 = dma.hbm_to_vmem [thread:$0]  (%p1075_p4), %s1631_s6, %s1620_s18, %s1633_s30, %s1623_s21, %s1506_s4, %s1506_s4, %s1507_s5  }
  0x4f PF: > { %197 = sbr.rel (%p1602_p0) target bundleno = 498 (0x1f2), region = 32  ;;  %s1658_s7 = sand.u32 (!%p1602_p0), 1, %s1486_s13  }
  0x50   : > { %s1291_s8 = smul.u32 (!%p1602_p0), 1536, %s1658_s7  ;;  %s200_s9 = scalar_lea.sflag (!%p1602_p0), [#allocation4], %s1658_s7 }
  0x51   : > { %p1934_p1 = scmp.ne.s32.totalorder (!%p1602_p0), %s1930_s25, 0 }
  0x52   : > { %s1662_s10 = scalar_lea.vmem (!%p1602_p0), [#allocation3], %s1291_s8 }
  0x54   : > { %1469 = dma.done.wait (%p1934_p1), %s200_s9, 24576  }
  0x55   : > { %1471 = vsyncadd (%p1934_p1), %s200_s9, 4294942720 }
  0x56   : > { %1473 = dma.done.wait (%p1577_p5), [#allocation7], 32  }
  0x57   : > { %1475 = vsyncadd (%p1577_p5), [#allocation7], 4294967264  ;;  %v278_v0 = vld [vmem:[%s1662_s10 + $0xf8] sm:$0xff]  ;;  %v277_v4 = vld [vmem:[%s1662_s10 + $0xf0] sm:$0xff]  ;;  %v1508_v18 = vmov 0   ;;  %s1292_s29 = smul.u32 24, %s1658_s7 }
  0x58   : > { %v310_v1 = vld [vmem:[%s1662_s10 + $0x1f8] sm:$0xff]  ;;  %1086 = vmatprep.subr.mxu0 %v278_v0  ;;  %v309_v5 = vld [vmem:[%s1662_s10 + $0x1f0] sm:$0xff]  ;;  %v276_v8 = vld [vmem:[%s1662_s10 + $0xe8] sm:$0xff]  ;;  %1365 = vset.pattern.permute.xlu0 %v1508_v18  ;;  %s1085_s21 = smul.u32 384, %s1494_s15  ;;  %s963_s24 = scalar_lea.sflag [#allocation5], %s1658_s7 }
  0x59   : > { %v262_v2 = vld [vmem:[%s1662_s10 + $0x78] sm:$0xff]  ;;  %1120 = vmatprep.subr.mxu1 %v310_v1  ;;  %v261_v6 = vld [vmem:[%s1662_s10 + $0x70] sm:$0xff]  ;;  %v308_v9 = vld [vmem:[%s1662_s10 + $0x1e8] sm:$0xff]  ;;  %s229_s18 = scalar_lea.vmem [#allocation8], %s1292_s29  ;;  %p1935_p0 = scmp.ne.s32.totalorder %s1931_s26, 0 }
  0x5a   : > { %v294_v3 = vld [vmem:[%s1662_s10 + $0x178] sm:$0xff]  ;;  %1087 = vmatpush3.xpose.msra.mxu0 %v262_v2  ;;  %v293_v7 = vld [vmem:[%s1662_s10 + $0x170] sm:$0xff]  ;;  %v260_v10 = vld [vmem:[%s1662_s10 + $0x68] sm:$0xff]  ;;  %s977_s30 = sshll.u32 %s229_s18, 4  ;;  %s975_s19 = scalar_lea.hbm %s1925_s3, %s1085_s21  ;;  %s978_s30 = int_to_ptr.vmem [resolvable:$true] %s977_s30 }
  0x5b   : > { %1121 = vmatpush3.xpose.msra.mxu1 %v294_v3  ;;  %1088 = vmatprep.subr.mxu0 %v277_v4  ;;  %v292_v11 = vld [vmem:[%s1662_s10 + $0x168] sm:$0xff]  ;;  %v275_v12 = vld [vmem:[%s1662_s10 + $0xe0] sm:$0xff]  ;;  %v274_v16 = vld [vmem:[%s1662_s10 + $0xd8] sm:$0xff]  ;;  %s1418_s22 = scalar_lea.vmem %s978_s30, 384  ;;  %s1511_s4 = smov [#allocation8]  }
  0x5c   : > { %1122 = vmatprep.subr.mxu1 %v309_v5  ;;  %v307_v13 = vld [vmem:[%s1662_s10 + $0x1e0] sm:$0xff]  ;;  %v306_v17 = vld [vmem:[%s1662_s10 + $0x1d8] sm:$0xff]  ;;  %v273_v21 = vld [vmem:[%s1662_s10 + $0xd0] sm:$0xff]  ;;  %p1419_p5 = scmp.ne.s32.totalorder %s978_s30, %s1418_s22  ;;  %s1422_s5 = sshll.u32 %s1511_s4, 4  ;;  %s1423_s5 = int_to_ptr.vmem [resolvable:$false] %s1422_s5 }
  0x5d   : > { %v259_v14 = vld [vmem:[%s1662_s10 + $0x60] sm:$0xff]  ;;  %v258_v19 = vld [vmem:[%s1662_s10 + $0x58] sm:$0xff]  ;;  %v305_v22 = vld [vmem:[%s1662_s10 + $0x1d0] sm:$0xff]  ;;  %s1424_s8 = scalar_lea.vmem %s1423_s5, 768  ;;  %p1425_p6 = scmp.lt.s32.totalorder %s978_s30, %s1423_s5 }
  0x5e   : > { %1089 = vmatpush3.xpose.msra.mxu0 %v261_v6  ;;  %v291_v15 = vld [vmem:[%s1662_s10 + $0x160] sm:$0xff]  ;;  %v290_v20 = vld [vmem:[%s1662_s10 + $0x158] sm:$0xff]  ;;  %v257_v23 = vld [vmem:[%s1662_s10 + $0x50] sm:$0xff]  ;;  %p1420_p4 = pnand %p1419_p5, %p1935_p0  ;;  %p1426_p3 = scmp.lt.s32.totalorder %s1424_s8, %s1418_s22 }
  0x5f   : > { %1123 = vmatpush3.xpose.msra.mxu1 %v293_v7  ;;  %1090 = vmatprep.subr.mxu0 %v276_v8  ;;  %v289_v24 = vld [vmem:[%s1662_s10 + $0x150] sm:$0xff]  ;;  %v272_v25 = vld [vmem:[%s1662_s10 + $0xc8] sm:$0xff]  ;;  %v1698_v27 = vld [vmem:[#allocation6] sm:$0x3] }
  0x60   : > { %1124 = vmatprep.subr.mxu1 %v308_v9  ;;  %v304_v26 = vld [vmem:[%s1662_s10 + $0x1c8] sm:$0xff]  ;;  %v271_v30 = vld [vmem:[%s1662_s10 + $0xc0] sm:$0xff]  ;;  %1118 = vmatprep.mubr.f32.mxu0 %v1698_v27  ;;  %v270_v34 = vld [vmem:[%s1662_s10 + $0xb8] sm:$0xff]  ;;  %p1421_p2 = pneg %p1420_p4  ;;  %p1427_p7 = por %p1426_p3, %p1425_p6 }
  0x61   : > { %v256_v28 = vld [vmem:[%s1662_s10 + $0x48] sm:$0xff]  ;;  %v303_v31 = vld [vmem:[%s1662_s10 + $0x1c0] sm:$0xff]  ;;  %1152 = vmatprep.mubr.f32.mxu1 %v1698_v27  ;;  %v302_v35 = vld [vmem:[%s1662_s10 + $0x1b8] sm:$0xff] }
  0x62   : > { %1091 = vmatpush3.xpose.msra.mxu0 %v260_v10  ;;  %v288_v29 = vld [vmem:[%s1662_s10 + $0x148] sm:$0xff]  ;;  %v255_v32 = vld [vmem:[%s1662_s10 + $0x40] sm:$0xff]  ;;  %v254_v36 = vld [vmem:[%s1662_s10 + $0x38] sm:$0xff]  ;;  %p1428_p10 = pnand %p1427_p7, %p1421_p2 }
  0x63   : > { %1125 = vmatpush3.xpose.msra.mxu1 %v292_v11  ;;  %1092 = vmatprep.subr.mxu0 %v275_v12  ;;  %v287_v33 = vld [vmem:[%s1662_s10 + $0x140] sm:$0xff]  ;;  %v286_v37 = vld [vmem:[%s1662_s10 + $0x138] sm:$0xff]  ;;  %v269_v38 = vld [vmem:[%s1662_s10 + $0xb0] sm:$0xff] }
  0x64   : > { %1126 = vmatprep.subr.mxu1 %v307_v13  ;;  %v301_v39 = vld [vmem:[%s1662_s10 + $0x1b0] sm:$0xff]  ;;  %v268_v42 = vld [vmem:[%s1662_s10 + $0xa8] sm:$0xff]  ;;  %v267_v46 = vld [vmem:[%s1662_s10 + $0xa0] sm:$0xff] }
  0x65   : > { %v253_v40 = vld [vmem:[%s1662_s10 + $0x30] sm:$0xff]  ;;  %v300_v43 = vld [vmem:[%s1662_s10 + $0x1a8] sm:$0xff]  ;;  %v299_v47 = vld [vmem:[%s1662_s10 + $0x1a0] sm:$0xff] }
  0x66   : > { %1093 = vmatpush3.xpose.msra.mxu0 %v259_v14  ;;  %v285_v41 = vld [vmem:[%s1662_s10 + $0x130] sm:$0xff]  ;;  %v252_v44 = vld [vmem:[%s1662_s10 + $0x28] sm:$0xff]  ;;  %v251_v48 = vld [vmem:[%s1662_s10 + $0x20] sm:$0xff] }
  0x67   : > { %1127 = vmatpush3.xpose.msra.mxu1 %v291_v15  ;;  %1094 = vmatprep.subr.mxu0 %v274_v16  ;;  %v284_v45 = vld [vmem:[%s1662_s10 + $0x128] sm:$0xff]  ;;  %v283_v49 = vld [vmem:[%s1662_s10 + $0x120] sm:$0xff]  ;;  %v266_v50 = vld [vmem:[%s1662_s10 + $0x98] sm:$0xff] }
  0x68   : > { %1128 = vmatprep.subr.mxu1 %v306_v17  ;;  %v298_v51 = vld [vmem:[%s1662_s10 + $0x198] sm:$0xff]  ;;  %v943_v54 = vld [vmem:[%s1924_s2] sm:$0x3]  ;;  %v265_v55 = vld [vmem:[%s1662_s10 + $0x90] sm:$0xff] }
  0x69   : > { %v250_v52 = vld [vmem:[%s1662_s10 + $0x18] sm:$0xff]  ;;  %v297_v56 = vld [vmem:[%s1662_s10 + $0x190] sm:$0xff]  ;;  %946 = vperm.xlu0 %1365, %v943_v54   ;;  %v264_v59 = vld [vmem:[%s1662_s10 + $0x88] sm:$0xff] }
  0x6a   : > { %1095 = vmatpush3.xpose.msra.mxu0 %v258_v19  ;;  %v282_v53 = vld [vmem:[%s1662_s10 + $0x118] sm:$0xff]  ;;  %v249_v57 = vld [vmem:[%s1662_s10 + $0x10] sm:$0xff]  ;;  %v296_v60 = vld [vmem:[%s1662_s10 + $0x188] sm:$0xff] }
  0x6b   : > { %1129 = vmatpush3.xpose.msra.mxu1 %v290_v20  ;;  %1096 = vmatprep.subr.mxu0 %v273_v21  ;;  %v281_v58 = vld [vmem:[%s1662_s10 + $0x110] sm:$0xff]  ;;  %v248_v61 = vld [vmem:[%s1662_s10 + $0x8] sm:$0xff]  ;;  %v263_v63 = vld [vmem:[%s1662_s10 + $0x80] sm:$0xff] }
  0x6c   : > { %1130 = vmatprep.subr.mxu1 %v305_v22  ;;  %v280_v62 = vld [vmem:[%s1662_s10 + $0x108] sm:$0xff]  ;;  %v295_v0 = vld [vmem:[%s1662_s10 + $0x180] sm:$0xff]  ;;  %v342_v3 = vld [vmem:[%s1662_s10 + $0x2f8] sm:$0xff] }
  0x6d   : > { %v247_v1 = vld [vmem:[%s1662_s10] sm:$0xff]  ;;  %v374_v4 = vld [vmem:[%s1662_s10 + $0x3f8] sm:$0xff]  ;;  %v341_v7 = vld [vmem:[%s1662_s10 + $0x2f0] sm:$0xff] }
  0x6e   : > { %1097 = vmatpush3.xpose.msra.mxu0 %v257_v23  ;;  %v279_v2 = vld [vmem:[%s1662_s10 + $0x100] sm:$0xff]  ;;  %v326_v5 = vld [vmem:[%s1662_s10 + $0x278] sm:$0xff]  ;;  %v373_v8 = vld [vmem:[%s1662_s10 + $0x3f0] sm:$0xff] }
  0x6f   : > { %1131 = vmatpush3.xpose.msra.mxu1 %v289_v24  ;;  %1098 = vmatprep.subr.mxu0 %v272_v25  ;;  %v358_v6 = vld [vmem:[%s1662_s10 + $0x378] sm:$0xff]  ;;  %v325_v9 = vld [vmem:[%s1662_s10 + $0x270] sm:$0xff]  ;;  %v340_v11 = vld [vmem:[%s1662_s10 + $0x2e8] sm:$0xff] }
  0x70   : > { %1132 = vmatprep.subr.mxu1 %v304_v26  ;;  %v357_v10 = vld [vmem:[%s1662_s10 + $0x370] sm:$0xff]  ;;  %v372_v12 = vld [vmem:[%s1662_s10 + $0x3e8] sm:$0xff]  ;;  %v339_v15 = vld [vmem:[%s1662_s10 + $0x2e0] sm:$0xff] }
  0x71   : > { %v324_v13 = vld [vmem:[%s1662_s10 + $0x268] sm:$0xff]  ;;  %v371_v16 = vld [vmem:[%s1662_s10 + $0x3e0] sm:$0xff]  ;;  %v338_v19 = vld [vmem:[%s1662_s10 + $0x2d8] sm:$0xff] }
  0x72   : > { %1099 = vmatpush3.xpose.msra.mxu0 %v256_v28  ;;  %v356_v14 = vld [vmem:[%s1662_s10 + $0x368] sm:$0xff]  ;;  %v323_v17 = vld [vmem:[%s1662_s10 + $0x260] sm:$0xff]  ;;  %v370_v20 = vld [vmem:[%s1662_s10 + $0x3d8] sm:$0xff] }
  0x73   : > { %1133 = vmatpush3.xpose.msra.mxu1 %v288_v29  ;;  %1100 = vmatprep.subr.mxu0 %v271_v30  ;;  %v355_v18 = vld [vmem:[%s1662_s10 + $0x360] sm:$0xff]  ;;  %v322_v21 = vld [vmem:[%s1662_s10 + $0x258] sm:$0xff]  ;;  %v337_v23 = vld [vmem:[%s1662_s10 + $0x2d0] sm:$0xff] }
  0x74   : > { %1134 = vmatprep.subr.mxu1 %v303_v31  ;;  %v354_v22 = vld [vmem:[%s1662_s10 + $0x358] sm:$0xff]  ;;  %v369_v24 = vld [vmem:[%s1662_s10 + $0x3d0] sm:$0xff]  ;;  %v336_v28 = vld [vmem:[%s1662_s10 + $0x2c8] sm:$0xff] }
  0x75   : > { %v321_v25 = vld [vmem:[%s1662_s10 + $0x250] sm:$0xff]  ;;  %v368_v29 = vld [vmem:[%s1662_s10 + $0x3c8] sm:$0xff]  ;;  %v314_v54 = vld [vmem:[%s1662_s10 + $0x218] sm:$0xff] }
  0x76   : > { %1101 = vmatpush3.xpose.msra.mxu0 %v255_v32  ;;  %v353_v26 = vld [vmem:[%s1662_s10 + $0x350] sm:$0xff]  ;;  %v320_v30 = vld [vmem:[%s1662_s10 + $0x248] sm:$0xff]  ;;  %v335_v32 = vld [vmem:[%s1662_s10 + $0x2c0] sm:$0xff] }
  0x77   : > { %1135 = vmatpush3.xpose.msra.mxu1 %v287_v33  ;;  %1102 = vmatprep.subr.mxu0 %v270_v34  ;;  %v352_v31 = vld [vmem:[%s1662_s10 + $0x348] sm:$0xff]  ;;  %v367_v33 = vld [vmem:[%s1662_s10 + $0x3c0] sm:$0xff] }
  0x78   : > { %1136 = vmatprep.subr.mxu1 %v302_v35  ;;  %v319_v34 = vld [vmem:[%s1662_s10 + $0x240] sm:$0xff] }
  0x79   : > { %v351_v35 = vld [vmem:[%s1662_s10 + $0x340] sm:$0xff] }
  0x7a   : > { %1103 = vmatpush3.xpose.msra.mxu0 %v254_v36  ;;  %v334_v36 = vld [vmem:[%s1662_s10 + $0x2b8] sm:$0xff] }
  0x7b   : > { %1137 = vmatpush3.xpose.msra.mxu1 %v286_v37  ;;  %1104 = vmatprep.subr.mxu0 %v269_v38  ;;  %v366_v37 = vld [vmem:[%s1662_s10 + $0x3b8] sm:$0xff] }
  0x7c   : > { %1138 = vmatprep.subr.mxu1 %v301_v39  ;;  %v318_v38 = vld [vmem:[%s1662_s10 + $0x238] sm:$0xff] }
  0x7d   : > { %v350_v39 = vld [vmem:[%s1662_s10 + $0x338] sm:$0xff] }
  0x7e   : > { %1105 = vmatpush3.xpose.msra.mxu0 %v253_v40  ;;  %v333_v40 = vld [vmem:[%s1662_s10 + $0x2b0] sm:$0xff] }
  0x7f   : > { %1139 = vmatpush3.xpose.msra.mxu1 %v285_v41  ;;  %1106 = vmatprep.subr.mxu0 %v268_v42  ;;  %v365_v41 = vld [vmem:[%s1662_s10 + $0x3b0] sm:$0xff] }
  0x80   : > { %1140 = vmatprep.subr.mxu1 %v300_v43  ;;  %v317_v42 = vld [vmem:[%s1662_s10 + $0x230] sm:$0xff] }
  0x81   : > { %v349_v43 = vld [vmem:[%s1662_s10 + $0x330] sm:$0xff] }
  0x82   : > { %1107 = vmatpush3.xpose.msra.mxu0 %v252_v44  ;;  %v332_v44 = vld [vmem:[%s1662_s10 + $0x2a8] sm:$0xff] }
  0x83   : > { %1141 = vmatpush3.xpose.msra.mxu1 %v284_v45  ;;  %1108 = vmatprep.subr.mxu0 %v267_v46  ;;  %v364_v45 = vld [vmem:[%s1662_s10 + $0x3a8] sm:$0xff] }
  0x84   : > { %1142 = vmatprep.subr.mxu1 %v299_v47  ;;  %v316_v46 = vld [vmem:[%s1662_s10 + $0x228] sm:$0xff] }
  0x85   : > { %v348_v47 = vld [vmem:[%s1662_s10 + $0x328] sm:$0xff] }
  0x86   : > { %1109 = vmatpush3.xpose.msra.mxu0 %v251_v48  ;;  %v331_v48 = vld [vmem:[%s1662_s10 + $0x2a0] sm:$0xff] }
  0x87   : > { %1143 = vmatpush3.xpose.msra.mxu1 %v283_v49  ;;  %1110 = vmatprep.subr.mxu0 %v266_v50  ;;  %v363_v49 = vld [vmem:[%s1662_s10 + $0x3a0] sm:$0xff] }
  0x88   : > { %1144 = vmatprep.subr.mxu1 %v298_v51  ;;  %v315_v50 = vld [vmem:[%s1662_s10 + $0x220] sm:$0xff] }
  0x89   : > { %v347_v51 = vld [vmem:[%s1662_s10 + $0x320] sm:$0xff] }
  0x8a   : > { %1111 = vmatpush3.xpose.msra.mxu0 %v250_v52  ;;  %v330_v52 = vld [vmem:[%s1662_s10 + $0x298] sm:$0xff] }
  0x8b   : > { %1145 = vmatpush3.xpose.msra.mxu1 %v282_v53  ;;  %1112 = vmatprep.subr.mxu0 %v265_v55  ;;  %v362_v53 = vld [vmem:[%s1662_s10 + $0x398] sm:$0xff] }
  0x8c   : > { %1146 = vmatprep.subr.mxu1 %v297_v56  ;;  %v346_v55 = vld [vmem:[%s1662_s10 + $0x318] sm:$0xff]  ;;  %v329_v56 = vld [vmem:[%s1662_s10 + $0x290] sm:$0xff] }
  0x8e   : > { %1113 = vmatpush3.xpose.msra.mxu0 %v249_v57  ;;  %v361_v57 = vld [vmem:[%s1662_s10 + $0x390] sm:$0xff] }
  0x8f   : > { %1147 = vmatpush3.xpose.msra.mxu1 %v281_v58  ;;  %1114 = vmatprep.subr.mxu0 %v264_v59  ;;  %v313_v58 = vld [vmem:[%s1662_s10 + $0x210] sm:$0xff] }
  0x90   : > { %1148 = vmatprep.subr.mxu1 %v296_v60  ;;  %v345_v59 = vld [vmem:[%s1662_s10 + $0x310] sm:$0xff]  ;;  %v328_v60 = vld [vmem:[%s1662_s10 + $0x288] sm:$0xff] }
  0x92   : > { %1115 = vmatpush3.xpose.msra.mxu0 %v248_v61  ;;  %v360_v61 = vld [vmem:[%s1662_s10 + $0x388] sm:$0xff] }
  0x93   : > { %1149 = vmatpush3.xpose.msra.mxu1 %v280_v62  ;;  %1116 = vmatprep.subr.mxu0 %v263_v63  ;;  %v312_v62 = vld [vmem:[%s1662_s10 + $0x208] sm:$0xff] }
  0x94   : > { %1150 = vmatprep.subr.mxu1 %v295_v0  ;;  %v344_v63 = vld [vmem:[%s1662_s10 + $0x308] sm:$0xff]  ;;  %v327_v0 = vld [vmem:[%s1662_s10 + $0x280] sm:$0xff] }
  0x96   : > { %1117 = vmatpush3.xpose.msra.mxu0 %v247_v1  ;;  %v359_v1 = vld [vmem:[%s1662_s10 + $0x380] sm:$0xff] }
  0x97   : > { %1151 = vmatpush3.xpose.msra.mxu1 %v279_v2  ;;  %1154 = vmatprep.subr.mxu0 %v342_v3  ;;  %v311_v2 = vld [vmem:[%s1662_s10 + $0x200] sm:$0xff] }
  0x98   : > { %1188 = vmatprep.subr.mxu1 %v374_v4  ;;  %v343_v3 = vld [vmem:[%s1662_s10 + $0x300] sm:$0xff]  ;;  %v406_v4 = vld [vmem:[%s1662_s10 + $0x4f8] sm:$0xff] }
  0x99   : > { %1119 = vmatmul.mubr.f32.vlgmr.msra.gmra.mxu0 %v1698_v27 }
  0x9a   : > { %1153 = vmatmul.mubr.f32.vlgmr.msra.gmra.mxu1 %v1698_v27  ;;  %1155 = vmatpush3.xpose.msra.mxu0 %v326_v5  ;;  %v438_v5 = vld [vmem:[%s1662_s10 + $0x5f8] sm:$0xff] }
  0x9b   : > { %1189 = vmatpush3.xpose.msra.mxu1 %v358_v6  ;;  %1156 = vmatprep.subr.mxu0 %v341_v7  ;;  %v390_v6 = vld [vmem:[%s1662_s10 + $0x478] sm:$0xff] }
  0x9c   : > { %1190 = vmatprep.subr.mxu1 %v373_v8  ;;  %1186 = vmatprep.mubr.f32.mxu0 %v1698_v27  ;;  %v422_v7 = vld [vmem:[%s1662_s10 + $0x578] sm:$0xff]  ;;  %v405_v8 = vld [vmem:[%s1662_s10 + $0x4f0] sm:$0xff] }
  0x9d   : > { %1220 = vmatprep.mubr.f32.mxu1 %v1698_v27 }
  0x9e   : > { %1157 = vmatpush3.xpose.msra.mxu0 %v325_v9  ;;  %v437_v9 = vld [vmem:[%s1662_s10 + $0x5f0] sm:$0xff] }
  0x9f   : > { %1191 = vmatpush3.xpose.msra.mxu1 %v357_v10  ;;  %1158 = vmatprep.subr.mxu0 %v340_v11  ;;  %v389_v10 = vld [vmem:[%s1662_s10 + $0x470] sm:$0xff] }
  0xa0   : > { %1192 = vmatprep.subr.mxu1 %v372_v12  ;;  %v421_v11 = vld [vmem:[%s1662_s10 + $0x570] sm:$0xff]  ;;  %v404_v12 = vld [vmem:[%s1662_s10 + $0x4e8] sm:$0xff] }
  0xa2   : > { %1159 = vmatpush3.xpose.msra.mxu0 %v324_v13  ;;  %v436_v13 = vld [vmem:[%s1662_s10 + $0x5e8] sm:$0xff] }
  0xa3   : > { %1193 = vmatpush3.xpose.msra.mxu1 %v356_v14  ;;  %1160 = vmatprep.subr.mxu0 %v339_v15  ;;  %v388_v14 = vld [vmem:[%s1662_s10 + $0x468] sm:$0xff] }
  0xa4   : > { %1194 = vmatprep.subr.mxu1 %v371_v16  ;;  %v420_v15 = vld [vmem:[%s1662_s10 + $0x568] sm:$0xff]  ;;  %v403_v16 = vld [vmem:[%s1662_s10 + $0x4e0] sm:$0xff] }
  0xa6   : > { %1161 = vmatpush3.xpose.msra.mxu0 %v323_v17  ;;  %v435_v17 = vld [vmem:[%s1662_s10 + $0x5e0] sm:$0xff] }
  0xa7   : > { %1195 = vmatpush3.xpose.msra.mxu1 %v355_v18  ;;  %1162 = vmatprep.subr.mxu0 %v338_v19  ;;  %v387_v18 = vld [vmem:[%s1662_s10 + $0x460] sm:$0xff] }
  0xa8   : > { %1196 = vmatprep.subr.mxu1 %v370_v20  ;;  %v419_v19 = vld [vmem:[%s1662_s10 + $0x560] sm:$0xff]  ;;  %v402_v20 = vld [vmem:[%s1662_s10 + $0x4d8] sm:$0xff] }
  0xaa   : > { %1163 = vmatpush3.xpose.msra.mxu0 %v322_v21  ;;  %v434_v21 = vld [vmem:[%s1662_s10 + $0x5d8] sm:$0xff] }
  0xab   : > { %1197 = vmatpush3.xpose.msra.mxu1 %v354_v22  ;;  %1164 = vmatprep.subr.mxu0 %v337_v23  ;;  %v386_v22 = vld [vmem:[%s1662_s10 + $0x458] sm:$0xff] }
  0xac   : > { %1198 = vmatprep.subr.mxu1 %v369_v24  ;;  %v418_v23 = vld [vmem:[%s1662_s10 + $0x558] sm:$0xff]  ;;  %v401_v24 = vld [vmem:[%s1662_s10 + $0x4d0] sm:$0xff] }
  0xae   : > { %1165 = vmatpush3.xpose.msra.mxu0 %v321_v25  ;;  %v433_v25 = vld [vmem:[%s1662_s10 + $0x5d0] sm:$0xff] }
  0xaf   : > { %1199 = vmatpush3.xpose.msra.mxu1 %v353_v26  ;;  %1166 = vmatprep.subr.mxu0 %v336_v28  ;;  %v385_v26 = vld [vmem:[%s1662_s10 + $0x450] sm:$0xff] }
  0xb0   : > { %1200 = vmatprep.subr.mxu1 %v368_v29  ;;  %v417_v28 = vld [vmem:[%s1662_s10 + $0x550] sm:$0xff]  ;;  %v400_v29 = vld [vmem:[%s1662_s10 + $0x4c8] sm:$0xff] }
  0xb2   : > { %1167 = vmatpush3.xpose.msra.mxu0 %v320_v30  ;;  %v432_v30 = vld [vmem:[%s1662_s10 + $0x5c8] sm:$0xff] }
  0xb3   : > { %1201 = vmatpush3.xpose.msra.mxu1 %v352_v31  ;;  %1168 = vmatprep.subr.mxu0 %v335_v32  ;;  %v384_v31 = vld [vmem:[%s1662_s10 + $0x448] sm:$0xff] }
  0xb4   : > { %1202 = vmatprep.subr.mxu1 %v367_v33  ;;  %v416_v32 = vld [vmem:[%s1662_s10 + $0x548] sm:$0xff]  ;;  %v399_v33 = vld [vmem:[%s1662_s10 + $0x4c0] sm:$0xff] }
  0xb6   : > { %1169 = vmatpush3.xpose.msra.mxu0 %v319_v34  ;;  %v431_v34 = vld [vmem:[%s1662_s10 + $0x5c0] sm:$0xff] }
  0xb7   : > { %1203 = vmatpush3.xpose.msra.mxu1 %v351_v35  ;;  %1170 = vmatprep.subr.mxu0 %v334_v36  ;;  %v383_v35 = vld [vmem:[%s1662_s10 + $0x440] sm:$0xff] }
  0xb8   : > { %1204 = vmatprep.subr.mxu1 %v366_v37  ;;  %v415_v36 = vld [vmem:[%s1662_s10 + $0x540] sm:$0xff]  ;;  %v398_v37 = vld [vmem:[%s1662_s10 + $0x4b8] sm:$0xff] }
  0xba   : > { %1171 = vmatpush3.xpose.msra.mxu0 %v318_v38  ;;  %v430_v38 = vld [vmem:[%s1662_s10 + $0x5b8] sm:$0xff] }
  0xbb   : > { %1205 = vmatpush3.xpose.msra.mxu1 %v350_v39  ;;  %1172 = vmatprep.subr.mxu0 %v333_v40  ;;  %v382_v39 = vld [vmem:[%s1662_s10 + $0x438] sm:$0xff] }
  0xbc   : > { %1206 = vmatprep.subr.mxu1 %v365_v41  ;;  %v414_v40 = vld [vmem:[%s1662_s10 + $0x538] sm:$0xff]  ;;  %v397_v41 = vld [vmem:[%s1662_s10 + $0x4b0] sm:$0xff] }
  0xbe   : > { %1173 = vmatpush3.xpose.msra.mxu0 %v317_v42  ;;  %v429_v42 = vld [vmem:[%s1662_s10 + $0x5b0] sm:$0xff] }
  0xbf   : > { %1207 = vmatpush3.xpose.msra.mxu1 %v349_v43  ;;  %1174 = vmatprep.subr.mxu0 %v332_v44  ;;  %v381_v43 = vld [vmem:[%s1662_s10 + $0x430] sm:$0xff] }
  0xc0   : > { %1208 = vmatprep.subr.mxu1 %v364_v45  ;;  %v413_v44 = vld [vmem:[%s1662_s10 + $0x530] sm:$0xff]  ;;  %v396_v45 = vld [vmem:[%s1662_s10 + $0x4a8] sm:$0xff] }
  0xc2   : > { %1175 = vmatpush3.xpose.msra.mxu0 %v316_v46  ;;  %v428_v46 = vld [vmem:[%s1662_s10 + $0x5a8] sm:$0xff] }
  0xc3   : > { %1209 = vmatpush3.xpose.msra.mxu1 %v348_v47  ;;  %1176 = vmatprep.subr.mxu0 %v331_v48  ;;  %v380_v47 = vld [vmem:[%s1662_s10 + $0x428] sm:$0xff] }
  0xc4   : > { %1210 = vmatprep.subr.mxu1 %v363_v49  ;;  %v412_v48 = vld [vmem:[%s1662_s10 + $0x528] sm:$0xff]  ;;  %v395_v49 = vld [vmem:[%s1662_s10 + $0x4a0] sm:$0xff] }
  0xc6   : > { %1177 = vmatpush3.xpose.msra.mxu0 %v315_v50  ;;  %v427_v50 = vld [vmem:[%s1662_s10 + $0x5a0] sm:$0xff] }
  0xc7   : > { %1211 = vmatpush3.xpose.msra.mxu1 %v347_v51  ;;  %1178 = vmatprep.subr.mxu0 %v330_v52  ;;  %v379_v51 = vld [vmem:[%s1662_s10 + $0x420] sm:$0xff] }
  0xc8   : > { %1212 = vmatprep.subr.mxu1 %v362_v53  ;;  %v411_v52 = vld [vmem:[%s1662_s10 + $0x520] sm:$0xff]  ;;  %v394_v53 = vld [vmem:[%s1662_s10 + $0x498] sm:$0xff] }
  0xca   : > { %1179 = vmatpush3.xpose.msra.mxu0 %v314_v54  ;;  %v426_v54 = vld [vmem:[%s1662_s10 + $0x598] sm:$0xff] }
  0xcb   : > { %1213 = vmatpush3.xpose.msra.mxu1 %v346_v55  ;;  %1180 = vmatprep.subr.mxu0 %v329_v56  ;;  %v378_v55 = vld [vmem:[%s1662_s10 + $0x418] sm:$0xff] }
  0xcc   : > { %1214 = vmatprep.subr.mxu1 %v361_v57  ;;  %v410_v56 = vld [vmem:[%s1662_s10 + $0x518] sm:$0xff]  ;;  %v393_v57 = vld [vmem:[%s1662_s10 + $0x490] sm:$0xff] }
  0xce   : > { %1181 = vmatpush3.xpose.msra.mxu0 %v313_v58  ;;  %v425_v58 = vld [vmem:[%s1662_s10 + $0x590] sm:$0xff] }
  0xcf   : > { %1215 = vmatpush3.xpose.msra.mxu1 %v345_v59  ;;  %1182 = vmatprep.subr.mxu0 %v328_v60  ;;  %v377_v59 = vld [vmem:[%s1662_s10 + $0x410] sm:$0xff] }
  0xd0   : > { %1216 = vmatprep.subr.mxu1 %v360_v61  ;;  %v409_v60 = vld [vmem:[%s1662_s10 + $0x510] sm:$0xff]  ;;  %v392_v61 = vld [vmem:[%s1662_s10 + $0x488] sm:$0xff] }
  0xd2   : > { %1183 = vmatpush3.xpose.msra.mxu0 %v312_v62  ;;  %v424_v62 = vld [vmem:[%s1662_s10 + $0x588] sm:$0xff] }
  0xd3   : > { %1217 = vmatpush3.xpose.msra.mxu1 %v344_v63  ;;  %1184 = vmatprep.subr.mxu0 %v327_v0  ;;  %v376_v63 = vld [vmem:[%s1662_s10 + $0x408] sm:$0xff] }
  0xd4   : > { %1218 = vmatprep.subr.mxu1 %v359_v1  ;;  %v408_v0 = vld [vmem:[%s1662_s10 + $0x508] sm:$0xff]  ;;  %v391_v1 = vld [vmem:[%s1662_s10 + $0x480] sm:$0xff] }
  0xd6   : > { %1185 = vmatpush3.xpose.msra.mxu0 %v311_v2  ;;  %v423_v2 = vld [vmem:[%s1662_s10 + $0x580] sm:$0xff] }
  0xd7   : > { %1219 = vmatpush3.xpose.msra.mxu1 %v343_v3  ;;  %1222 = vmatprep.subr.mxu0 %v406_v4  ;;  %v375_v3 = vld [vmem:[%s1662_s10 + $0x400] sm:$0xff] }
  0xd8   : > { %1256 = vmatprep.subr.mxu1 %v438_v5  ;;  %v407_v4 = vld [vmem:[%s1662_s10 + $0x500] sm:$0xff]  ;;  %v1509_v5 = vmov 1983009808  }
  0xd9   : > { %1187 = vmatmul.mubr.f32.vlgmr.msra.gmra.mxu0 %v1698_v27 }
  0xda   : > { %1221 = vmatmul.mubr.f32.vlgmr.msra.gmra.mxu1 %v1698_v27  ;;  %1223 = vmatpush3.xpose.msra.mxu0 %v390_v6  ;;  %v880_v6 = vunpack.c.l.s4 %v1509_v5 }
  0xdb   : > { %1257 = vmatpush3.xpose.msra.mxu1 %v422_v7  ;;  %1224 = vmatprep.subr.mxu0 %v405_v8  ;;  %v882_v7 = vlaneseq  ;;  %v1510_v8 = vmov 269488144  }
  0xdc   : > { %1258 = vmatprep.subr.mxu1 %v437_v9  ;;  %1254 = vmatprep.mubr.f32.mxu0 %v1698_v27  ;;  %v949_v9 = vunpack.c.l.s4 %v1510_v8 }
  0xdd   : > { %1288 = vmatprep.mubr.f32.mxu1 %v1698_v27 }
  0xde   : > { %1225 = vmatpush3.xpose.msra.mxu0 %v389_v10  ;;  %v881_v10 = vunpack.c.0.s8 %v880_v6 }
  0xdf   : > { %1259 = vmatpush3.xpose.msra.mxu1 %v421_v11  ;;  %1226 = vmatprep.subr.mxu0 %v404_v12  ;;  %v883_v11 = vshrl.u32 %v882_v7, 7  ;;  %v950_v12 = vunpack.c.0.s8 %v949_v9 }
  0xe0   : > { %1260 = vmatprep.subr.mxu1 %v436_v13 }
  0xe2   : > { %1227 = vmatpush3.xpose.msra.mxu0 %v388_v14 }
  0xe3   : > { %1261 = vmatpush3.xpose.msra.mxu1 %v420_v15  ;;  %1228 = vmatprep.subr.mxu0 %v403_v16  ;;  %v884_v15 = vsub.s32 %v881_v10, %v883_v11  ;;  %v953_v16 = vsub.s32 %v950_v12, %v883_v11 }
  0xe4   : > { %1262 = vmatprep.subr.mxu1 %v435_v17  ;;  %v947_v17 = vpop.permute.xlu0 %946 }
  0xe6   : > { %1229 = vmatpush3.xpose.msra.mxu0 %v387_v18 }
  0xe7   : > { %1263 = vmatpush3.xpose.msra.mxu1 %v419_v19  ;;  %1230 = vmatprep.subr.mxu0 %v402_v20 }
  0xe8   : > { %1264 = vmatprep.subr.mxu1 %v434_v21 }
  0xea   : > { %1231 = vmatpush3.xpose.msra.mxu0 %v386_v22 }
  0xeb   : > { %1265 = vmatpush3.xpose.msra.mxu1 %v418_v23  ;;  %1232 = vmatprep.subr.mxu0 %v401_v24  ;;  %v954_v23 = vrot.slane %v947_v17, %v953_v16 }
  0xec   : > { %1266 = vmatprep.subr.mxu1 %v433_v25 }
  0xee   : > { %1233 = vmatpush3.xpose.msra.mxu0 %v385_v26 }
  0xef   : > { %1267 = vmatpush3.xpose.msra.mxu1 %v417_v28  ;;  %1234 = vmatprep.subr.mxu0 %v400_v29 }
  0xf0   : > { %1268 = vmatprep.subr.mxu1 %v432_v30 }
  0xf2   : > { %1235 = vmatpush3.xpose.msra.mxu0 %v384_v31 }
  0xf3   : > { %1269 = vmatpush3.xpose.msra.mxu1 %v416_v32  ;;  %1236 = vmatprep.subr.mxu0 %v399_v33 }
  0xf4   : > { %1270 = vmatprep.subr.mxu1 %v431_v34 }
  0xf6   : > { %1237 = vmatpush3.xpose.msra.mxu0 %v383_v35 }
  0xf7   : > { %1271 = vmatpush3.xpose.msra.mxu1 %v415_v36  ;;  %1238 = vmatprep.subr.mxu0 %v398_v37 }
  0xf8   : > { %1272 = vmatprep.subr.mxu1 %v430_v38 }
  0xfa   : > { %1239 = vmatpush3.xpose.msra.mxu0 %v382_v39 }
  0xfb   : > { %1273 = vmatpush3.xpose.msra.mxu1 %v414_v40  ;;  %1240 = vmatprep.subr.mxu0 %v397_v41 }
  0xfc   : > { %1274 = vmatprep.subr.mxu1 %v429_v42 }
  0xfe   : > { %1241 = vmatpush3.xpose.msra.mxu0 %v381_v43 }
  0xff   : > { %1275 = vmatpush3.xpose.msra.mxu1 %v413_v44  ;;  %1242 = vmatprep.subr.mxu0 %v396_v45 }
 0x100   : > { %1276 = vmatprep.subr.mxu1 %v428_v46 }
 0x102   : > { %1243 = vmatpush3.xpose.msra.mxu0 %v380_v47 }
 0x103   : > { %1277 = vmatpush3.xpose.msra.mxu1 %v412_v48  ;;  %1244 = vmatprep.subr.mxu0 %v395_v49 }
 0x104   : > { %1278 = vmatprep.subr.mxu1 %v427_v50 }
 0x106   : > { %1245 = vmatpush3.xpose.msra.mxu0 %v379_v51 }
 0x107   : > { %1279 = vmatpush3.xpose.msra.mxu1 %v411_v52  ;;  %1246 = vmatprep.subr.mxu0 %v394_v53 }
 0x108   : > { %1280 = vmatprep.subr.mxu1 %v426_v54 }
 0x10a   : > { %1247 = vmatpush3.xpose.msra.mxu0 %v378_v55 }
 0x10b   : > { %1281 = vmatpush3.xpose.msra.mxu1 %v410_v56  ;;  %1248 = vmatprep.subr.mxu0 %v393_v57 }
 0x10c   : > { %1282 = vmatprep.subr.mxu1 %v425_v58 }
 0x10e   : > { %1249 = vmatpush3.xpose.msra.mxu0 %v377_v59 }
 0x10f   : > { %1283 = vmatpush3.xpose.msra.mxu1 %v409_v60  ;;  %1250 = vmatprep.subr.mxu0 %v392_v61 }
 0x110   : > { %1284 = vmatprep.subr.mxu1 %v424_v62 }
 0x112   : > { %1251 = vmatpush3.xpose.msra.mxu0 %v376_v63 }
 0x113   : > { %1285 = vmatpush3.xpose.msra.mxu1 %v408_v0  ;;  %1252 = vmatprep.subr.mxu0 %v391_v1 }
 0x114   : > { %1286 = vmatprep.subr.mxu1 %v423_v2 }
 0x116   : > { %1253 = vmatpush3.xpose.msra.mxu0 %v375_v3 }
 0x117   : > { %1287 = vmatpush3.xpose.msra.mxu1 %v407_v4 }
 0x119   : > { %1255 = vmatmul.mubr.f32.vlgmr.msra.gmra.mxu0 %v1698_v27 }
 0x11a   : > { %1289 = vmatmul.mubr.f32.vlgmr.msra.gmra.mxu1 %v1698_v27 }
 0x159   : > { %v505_v13 = vpop.f32.mrf.mxu0 }
 0x15a   : > { %v576_v14 = vpop.f32.mrf.mxu1 }
 0x15b   : > { %v507_v18 = vpop.f32.mrf.mxu0 }
 0x15c   : > { %v578_v19 = vpop.f32.mrf.mxu1  ;;  %v877_v20 = vcombine.low %v505_v13, %v507_v18 }
 0x15d   : > { %v878_v21 = vcombine.low %v576_v14, %v578_v19 }
 0x15e   : > { %v885_v27 = vrot.slane %v877_v20, %v884_v15 }
 0x15f   : > { %v892_v22 = vrot.slane %v878_v21, %v884_v15 }
 0x161   : > { %v893_v24 = vcombine.low %v885_v27, %v892_v22 }
 0x163   : > { %v956_v25 = vadd.f32 %v954_v23, %v893_v24 }
 0x165   : > { %959 = vst [vmem:[%s229_s18] sm:$0xff] %v956_v25 }
 0x199   : > { %v647_v26 = vpop.f32.mrf.mxu0 }
 0x19a   : > { %v718_v28 = vpop.f32.mrf.mxu1 }
 0x19b   : > { %v649_v29 = vpop.f32.mrf.mxu0 }
 0x19c   : > { %v720_v30 = vpop.f32.mrf.mxu1  ;;  %v894_v31 = vcombine.low %v647_v26, %v649_v29 }
 0x19d   : > { %v895_v32 = vcombine.low %v718_v28, %v720_v30 }
 0x19e   : > { %v902_v33 = vrot.slane %v894_v31, %v884_v15 }
 0x19f   : > { %v909_v34 = vrot.slane %v895_v32, %v884_v15 }
 0x1a1   : > { %v910_v35 = vcombine.low %v902_v33, %v909_v34 }
 0x1a3   : > { %v957_v36 = vadd.f32 %v954_v23, %v910_v35 }
 0x1a5   : > { %960 = vst [vmem:[%s229_s18 + $0x8] sm:$0xff] %v957_v36 }
 0x1d9   : > { %v789_v37 = vpop.f32.mrf.mxu0 }
 0x1da   : > { %v860_v38 = vpop.f32.mrf.mxu1 }
 0x1db   : > { %v791_v39 = vpop.f32.mrf.mxu0 }
 0x1dc   : > { %v862_v40 = vpop.f32.mrf.mxu1  ;;  %v911_v41 = vcombine.low %v789_v37, %v791_v39 }
 0x1dd   : > { %v912_v42 = vcombine.low %v860_v38, %v862_v40 }
 0x1de   : > { %v919_v43 = vrot.slane %v911_v41, %v884_v15 }
 0x1df   : > { %v926_v44 = vrot.slane %v912_v42, %v884_v15 }
 0x1e1   : > { %v927_v45 = vcombine.low %v919_v43, %v926_v44 }
 0x1e3   : > { %v958_v46 = vadd.f32 %v954_v23, %v927_v45 }
 0x1e5   : > { %961 = vst [vmem:[%s229_s18 + $0x10] sm:$0xff] %v958_v46 }
 0x1e6   : > { %1431 = shalt.err (!%p1428_p10)
}
 0x1e7   : > { %s1432_s15 = scalar_lea.hbm %s975_s19, 384  ;;  %s1436_s10 = scalar_lea.hbm %s1925_s3, 768 }
 0x1e8   : > { %p1433_p12 = scmp.ne.s32.totalorder %s975_s19, %s1432_s15  ;;  %p1437_p11 = scmp.lt.s32.totalorder %s975_s19, %s1925_s3 }
 0x1e9   : > { %p1438_p1 = scmp.lt.s32.totalorder %s1436_s10, %s1432_s15 }
 0x1ea   : > { %p1434_p8 = pnand %p1433_p12, %p1935_p0 }
 0x1eb   : > { %p1439_p5 = por %p1438_p1, %p1437_p11 }
 0x1ec   : > { %p1435_p9 = pneg %p1434_p8 }
 0x1ee   : > { %p1440_p4 = pnand %p1439_p5, %p1435_p9 }
 0x1f0   : > { %1443 = shalt.err (!%p1440_p4)
}
 0x1f1   : > { %1298 = dma.vmem_to_hbm [thread:$0]  (%p1935_p0), %s978_s30, 384, %s975_s19, %s963_s24  }
 0x1f2 PF: > { %s989_s29 = sand.u32 1, %s1482_s12   ;;  %p1936_p2 = scmp.ne.s32.totalorder %s1932_s28, 0 }
 0x1f3   : > { %s990_s18 = scalar_lea.sflag [#allocation5], %s989_s29 }
 0x1f4   : > { %p1305_p6 = pnand %p1073_p13, %p1936_p2 }
 0x1f6   : > { %p1306_p3 = pneg %p1305_p6 }
 0x1f8   : > { %1477 = dma.done.wait (%p1306_p3), %s990_s18, 384  }
 0x1f9   : > { %1479 = vsyncadd (%p1306_p3), %s990_s18, 4294966912  ;;  %s20_s17 = sadd.s32 1, %s1502_s17   ;;  %s1937_s12 = smov %s1486_s13 }
 0x1fa   : > { %p17_p7 = scmp.ge.s32.totalorder %s20_s17, 4   ;;  %s1938_s13 = smov %s1490_s14 }
 0x1fb   : > { %s1939_s14 = smov %s1594_s27  ;;  %s1940_s15 = smov %s1498_s16 }
 0x1fc   : > { %s1941_s16 = smov %s1943_s20  ;;  %19 = sbr.rel (!%p17_p7) target bundleno = 7 (0x7), region = 90 }
 0x201   :  { %995 = vsyncpa [#allocation4], 1 }
 0x202   :  { %997 = vsyncpa [#allocation4 + $0x1], 1 }
 0x203   :  { %998 = vsyncpa [#allocation7], 1 }
 0x204   :  { %999 = vsyncpa [#allocation5], 1 }
 0x205   :  { %1001 = vsyncpa [#allocation5 + $0x1], 1 }

</bundles_post_ra>
